<compile_context>
chip_gen: v7x
topology: tpu7x:2x2x1
jax: 0.10.0
libtpu: 0.0.40
codegen_flags: <defaults>
</compile_context>

<pallas_src>
import functools

import numpy as np
import jax
import jax.numpy as jnp
from jax import lax
from jax.experimental import pallas as pl
from jax.experimental.pallas import tpu as pltpu


def _build_tap_masks(H, W):
    """(9, 1, H*W) float masks (1.0 = inside image) + lane shift per 3x3 tap."""
    P = H * W
    pos = np.arange(P)
    row, col = pos // W, pos % W
    masks, taps = [], []
    for dh in (-1, 0, 1):
        for dw in (-1, 0, 1):
            valid = np.ones(P, dtype=bool)
            if dh < 0:
                valid &= row >= -dh
            if dh > 0:
                valid &= row < H - dh
            if dw < 0:
                valid &= col >= -dw
            if dw > 0:
                valid &= col < W - dw
            masks.append(valid.astype(np.float32))
            taps.append(dh * W + dw)
    return jnp.asarray(np.stack(masks)[:, None, :]), tuple(taps)


def _groups_per_step(M, K_in, K_out, P, itemsize=4):
    """How many image-groups to process per grid step (amortize step overhead)."""
    per_group = (K_in + K_out) * P * itemsize          # in + out block bytes / group
    budget = 6 * 1024 * 1024                           # keep 2x-buffered blocks small
    cap = max(1, budget // (2 * per_group))
    # Keep >= ~8 grid steps when there is enough work (megacore + DMA pipelining),
    # otherwise fold everything into as few steps as possible.
    nbg = max(1, min(cap, -(-M // 8)))
    return int(min(nbg, M))


def conv3x3_relu_kernel(mask_ref, x_ref, w_ref, b_ref, o_ref, *, nbg, taps):
    # mask_ref: (9, 1, P)        per-tap boundary masks (DMA'd once)
    # x_ref:    (nbg, K, P)      nbg image-groups, K = G*C_in sublane rows (mult of 8)
    # w_ref:    (G*C_out, 9*K)   block-diagonal filter matrix (tap-major columns)
    # b_ref:    (G*C_out, 1)     bias (tiled over the G packed images)
    # o_ref:    (nbg, G*C_out, P) lane-dense output
    P = x_ref.shape[-1]
    w = w_ref[...]                                   # matmul dtype (f32 or bf16)
    bias = b_ref[...]                                # (G*C_out, 1) f32
    masks = [mask_ref[t] for t in range(9)]          # nine (1, P) f32 rows, loaded once

    def body(i, carry):
        x = x_ref[i]                                 # (K, P) f32, K multiple of 8
        pieces = []
        for t, s in enumerate(taps):
            # shifted[c, p] == x[c, p + s]; wrapped lanes are zeroed by the mask.
            shifted = x if s == 0 else pltpu.roll(x, shift=(-s) % P, axis=1)
            # t == 4 is the centre tap of the 3x3 window: mask is all-ones, skip it.
            pieces.append(shifted if t == 4 else shifted * masks[t])
        # All pieces are 8-sublane aligned -> concat is pure vreg moves.
        col = jnp.concatenate(pieces, axis=0).astype(w.dtype)     # (9*K, P)
        acc = jnp.dot(w, col, preferred_element_type=jnp.float32) # (G*C_out, P)
        o_ref[i] = jnp.maximum(acc + bias, 0.0).astype(o_ref.dtype)
        return carry

    lax.fori_loop(0, nbg, body, 0, unroll=True)


def block_forward(x_nchw, w_oihw, bias, *, matmul_dtype=jnp.float32):
    """Forward pass of Block: Conv2d(k=3, pad=1) + ReLU.

    x_nchw: (N, C_in, H, W) float32, w_oihw: (C_out, C_in, 3, 3), bias: (C_out,)
    returns (N, C_out, H, W) float32.
    """
    N, C_in, H, W = x_nchw.shape
    C_out = w_oihw.shape[0]
    P = H * W

    # ---- sublane packing: fill all 8 sublanes of every vreg ----------------
    if C_in <= 8 and 8 % C_in == 0:
        G, Cg = 8 // C_in, C_in                       # pack G images per group
        x_flat = x_nchw.reshape(N, C_in, P)
    else:
        G = 1
        Cg = -(-C_in // 8) * 8                        # pad channels to multiple of 8
        x_flat = jnp.pad(x_nchw.reshape(N, C_in, P),
                         ((0, 0), (0, Cg - C_in), (0, 0)))
    K = G * Cg                                        # sublane rows per group

    # ---- batch grouping / padding ------------------------------------------
    M = -(-N // G)                                    # number of image groups
    nbg = _groups_per_step(M, K, G * C_out, P)
    Mp = -(-M // nbg) * nbg
    n_pad = Mp * G - N
    if n_pad:
        x_flat = jnp.pad(x_flat, ((0, n_pad), (0, 0), (0, 0)))
    x_grp = x_flat.reshape(Mp, K, P)                  # contiguous reshape only

    # ---- weights: block-diagonal over the G packed images -------------------
    # column index = tap*(G*Cg) + g*Cg + c  must match the im2col row order.
    w_toc = jnp.transpose(w_oihw, (2, 3, 0, 1)).reshape(9, C_out, C_in)   # (tap,o,c)
    if Cg != C_in:
        w_toc = jnp.pad(w_toc, ((0, 0), (0, 0), (0, Cg - C_in)))
    eye = jnp.eye(G, dtype=w_toc.dtype)
    w_bd = jnp.einsum('gh,toc->gothc', eye, w_toc).reshape(G * C_out, 9 * K)
    w_bd = w_bd.astype(matmul_dtype)
    b_bd = jnp.tile(bias, G).reshape(G * C_out, 1)

    # ---- batch-invariant boundary masks (DMA'd once) ------------------------
    masks, taps = _build_tap_masks(H, W)

    grid = (Mp // nbg,)
    kernel = functools.partial(conv3x3_relu_kernel, nbg=nbg, taps=taps)

    in_bytes = nbg * K * P * 4
    out_bytes = nbg * G * C_out * P * 4
    vmem_limit = int(min(max(6 * (in_bytes + out_bytes), 16 << 20), 48 << 20))

    cost = pl.CostEstimate(
        flops=2 * N * C_out * 9 * C_in * P,
        transcendentals=0,
        bytes_accessed=int((x_nchw.size + w_oihw.size + bias.size + N * C_out * P) * 4),
    )

    out_grp = pl.pallas_call(
        kernel,
        out_shape=jax.ShapeDtypeStruct((Mp, G * C_out, P), x_nchw.dtype),
        grid_spec=pltpu.PrefetchScalarGridSpec(
            num_scalar_prefetch=0,
            grid=grid,
            in_specs=[
                pl.BlockSpec((9, 1, P), lambda m: (0, 0, 0)),          # masks (const)
                pl.BlockSpec((nbg, K, P), lambda m: (m, 0, 0)),        # images
                pl.BlockSpec((G * C_out, 9 * K), lambda m: (0, 0)),    # weights (const)
                pl.BlockSpec((G * C_out, 1), lambda m: (0, 0)),        # bias (const)
            ],
            out_specs=pl.BlockSpec((nbg, G * C_out, P), lambda m: (m, 0, 0)),
        ),
        compiler_params=pltpu.CompilerParams(
            dimension_semantics=("parallel",),
            vmem_limit_bytes=vmem_limit,
        ),
        cost_estimate=cost,
    )(masks, x_grp, w_bd, b_bd)

    # Free contiguous reshapes back to PyTorch NCHW (no transposes).
    out = out_grp.reshape(Mp * G, C_out, P)[:N]
    return out.reshape(N, C_out, H, W)


def reference_forward(x_nchw, w_oihw, bias):
    """Plain-JAX reference (same semantics as nn.Conv2d(pad=1) + ReLU)."""
    x_nhwc = jnp.transpose(x_nchw, (0, 2, 3, 1))
    w_hwio = jnp.transpose(w_oihw, (2, 3, 1, 0))
    y = lax.conv_general_dilated(
        x_nhwc, w_hwio, window_strides=(1, 1), padding="SAME",
        dimension_numbers=("NHWC", "HWIO", "NHWC"))
    y = jnp.maximum(y + bias[None, None, None, :], 0.0)
    return jnp.transpose(y, (0, 3, 1, 2))


if __name__ == "__main__":
    # Small deterministic setup consistent with Block(in_channels=4, out_channels=8).
    N, C_in, C_out, H, W = 2, 4, 8, 16, 16

    key = jax.random.PRNGKey(0)
    kx, kw, kb = jax.random.split(key, 3)

    x = jax.random.normal(kx, (N, C_in, H, W), dtype=jnp.float32)
    fan_in = C_in * 3 * 3
    w = jax.random.uniform(kw, (C_out, C_in, 3, 3), dtype=jnp.float32,
                           minval=-1.0, maxval=1.0) / jnp.sqrt(fan_in)
    b = jax.random.uniform(kb, (C_out,), dtype=jnp.float32,
                           minval=-0.1, maxval=0.1)

    out = jax.block_until_ready(block_forward(x, w, b))
    ref = jax.block_until_ready(reference_forward(x, w, b))

    assert out.shape == (N, C_out, H, W)
    assert jnp.allclose(out, ref, atol=1e-5, rtol=1e-5), "mismatch vs reference conv"

    print("KERNEL_OK")
</pallas_src>

<mosaic_0001>
module attributes {stable_mosaic.version = 11 : i64} {
  func.func @conv3x3_relu_kernel(%arg0: i32, %arg1: memref<9x1x256xf32, #tpu.memory_space<vmem>>, %arg2: memref<1x8x256xf32, #tpu.memory_space<vmem>>, %arg3: memref<16x72xf32, #tpu.memory_space<vmem>>, %arg4: memref<16x1xf32, #tpu.memory_space<vmem>>, %arg5: memref<1x16x256xf32, #tpu.memory_space<vmem>>) attributes {dimension_semantics = [#tpu.dimension_semantics<parallel>], iteration_bounds = array<i64: 1>, scalar_prefetch = 0 : i64, scratch_operands = 0 : i64, tpu.core_type = #tpu.core_type<tc>, window_params = [{pipeline_mode = #tpu.pipeline_mode<synchronous>, transform_indices = @transform_0, window_bounds = array<i64: 9, 1, 256>}, {transform_indices = @transform_1, window_bounds = array<i64: 1, 8, 256>}, {pipeline_mode = #tpu.pipeline_mode<synchronous>, transform_indices = @transform_2, window_bounds = array<i64: 16, 72>}, {pipeline_mode = #tpu.pipeline_mode<synchronous>, transform_indices = @transform_3, window_bounds = array<i64: 16, 1>}, {transform_indices = @transform_4, window_bounds = array<i64: 1, 16, 256>}]} {
    %c0 = arith.constant 0 : index
    %c0_0 = arith.constant 0 : index
    %0 = vector.load %arg3[%c0, %c0_0] : memref<16x72xf32, #tpu.memory_space<vmem>>, vector<16x72xf32>
    %c0_1 = arith.constant 0 : index
    %c0_2 = arith.constant 0 : index
    %1 = vector.load %arg4[%c0_1, %c0_2] : memref<16x1xf32, #tpu.memory_space<vmem>>, vector<16x1xf32>
    %c0_3 = arith.constant 0 : index
    %c0_4 = arith.constant 0 : index
    %c0_5 = arith.constant 0 : index
    %2 = vector.load %arg1[%c0_3, %c0_4, %c0_5] : memref<9x1x256xf32, #tpu.memory_space<vmem>>, vector<1x1x256xf32>
    %3 = vector.shape_cast %2 : vector<1x1x256xf32> to vector<1x256xf32>
    %c1 = arith.constant 1 : index
    %c0_6 = arith.constant 0 : index
    %c0_7 = arith.constant 0 : index
    %4 = vector.load %arg1[%c1, %c0_6, %c0_7] : memref<9x1x256xf32, #tpu.memory_space<vmem>>, vector<1x1x256xf32>
    %5 = vector.shape_cast %4 : vector<1x1x256xf32> to vector<1x256xf32>
    %c2 = arith.constant 2 : index
    %c0_8 = arith.constant 0 : index
    %c0_9 = arith.constant 0 : index
    %6 = vector.load %arg1[%c2, %c0_8, %c0_9] : memref<9x1x256xf32, #tpu.memory_space<vmem>>, vector<1x1x256xf32>
    %7 = vector.shape_cast %6 : vector<1x1x256xf32> to vector<1x256xf32>
    %c3 = arith.constant 3 : index
    %c0_10 = arith.constant 0 : index
    %c0_11 = arith.constant 0 : index
    %8 = vector.load %arg1[%c3, %c0_10, %c0_11] : memref<9x1x256xf32, #tpu.memory_space<vmem>>, vector<1x1x256xf32>
    %9 = vector.shape_cast %8 : vector<1x1x256xf32> to vector<1x256xf32>
    %c5 = arith.constant 5 : index
    %c0_12 = arith.constant 0 : index
    %c0_13 = arith.constant 0 : index
    %10 = vector.load %arg1[%c5, %c0_12, %c0_13] : memref<9x1x256xf32, #tpu.memory_space<vmem>>, vector<1x1x256xf32>
    %11 = vector.shape_cast %10 : vector<1x1x256xf32> to vector<1x256xf32>
    %c6 = arith.constant 6 : index
    %c0_14 = arith.constant 0 : index
    %c0_15 = arith.constant 0 : index
    %12 = vector.load %arg1[%c6, %c0_14, %c0_15] : memref<9x1x256xf32, #tpu.memory_space<vmem>>, vector<1x1x256xf32>
    %13 = vector.shape_cast %12 : vector<1x1x256xf32> to vector<1x256xf32>
    %c7 = arith.constant 7 : index
    %c0_16 = arith.constant 0 : index
    %c0_17 = arith.constant 0 : index
    %14 = vector.load %arg1[%c7, %c0_16, %c0_17] : memref<9x1x256xf32, #tpu.memory_space<vmem>>, vector<1x1x256xf32>
    %15 = vector.shape_cast %14 : vector<1x1x256xf32> to vector<1x256xf32>
    %c8 = arith.constant 8 : index
    %c0_18 = arith.constant 0 : index
    %c0_19 = arith.constant 0 : index
    %16 = vector.load %arg1[%c8, %c0_18, %c0_19] : memref<9x1x256xf32, #tpu.memory_space<vmem>>, vector<1x1x256xf32>
    %17 = vector.shape_cast %16 : vector<1x1x256xf32> to vector<1x256xf32>
    %c0_i32 = arith.constant 0 : i32
    %18 = arith.index_cast %c0_i32 : i32 to index
    %c0_20 = arith.constant 0 : index
    %c0_21 = arith.constant 0 : index
    %19 = vector.load %arg2[%18, %c0_20, %c0_21] : memref<1x8x256xf32, #tpu.memory_space<vmem>>, vector<1x8x256xf32>
    %20 = vector.shape_cast %19 : vector<1x8x256xf32> to vector<8x256xf32>
    %c17_i32 = arith.constant 17 : i32
    %21 = tpu.dynamic_rotate %20 by %c17_i32 dim 1 : vector<8x256xf32>, i32 -> vector<8x256xf32>
    %22 = vector.broadcast %3 : vector<1x256xf32> to vector<8x256xf32>
    %23 = arith.mulf %21, %22 : vector<8x256xf32>
    %c16_i32 = arith.constant 16 : i32
    %24 = tpu.dynamic_rotate %20 by %c16_i32 dim 1 : vector<8x256xf32>, i32 -> vector<8x256xf32>
    %25 = vector.broadcast %5 : vector<1x256xf32> to vector<8x256xf32>
    %26 = arith.mulf %24, %25 : vector<8x256xf32>
    %c15_i32 = arith.constant 15 : i32
    %27 = tpu.dynamic_rotate %20 by %c15_i32 dim 1 : vector<8x256xf32>, i32 -> vector<8x256xf32>
    %28 = vector.broadcast %7 : vector<1x256xf32> to vector<8x256xf32>
    %29 = arith.mulf %27, %28 : vector<8x256xf32>
    %c1_i32 = arith.constant 1 : i32
    %30 = tpu.dynamic_rotate %20 by %c1_i32 dim 1 : vector<8x256xf32>, i32 -> vector<8x256xf32>
    %31 = vector.broadcast %9 : vector<1x256xf32> to vector<8x256xf32>
    %32 = arith.mulf %30, %31 : vector<8x256xf32>
    %c255_i32 = arith.constant 255 : i32
    %33 = tpu.dynamic_rotate %20 by %c255_i32 dim 1 : vector<8x256xf32>, i32 -> vector<8x256xf32>
    %34 = vector.broadcast %11 : vector<1x256xf32> to vector<8x256xf32>
    %35 = arith.mulf %33, %34 : vector<8x256xf32>
    %c241_i32 = arith.constant 241 : i32
    %36 = tpu.dynamic_rotate %20 by %c241_i32 dim 1 : vector<8x256xf32>, i32 -> vector<8x256xf32>
    %37 = vector.broadcast %13 : vector<1x256xf32> to vector<8x256xf32>
    %38 = arith.mulf %36, %37 : vector<8x256xf32>
    %c240_i32 = arith.constant 240 : i32
    %39 = tpu.dynamic_rotate %20 by %c240_i32 dim 1 : vector<8x256xf32>, i32 -> vector<8x256xf32>
    %40 = vector.broadcast %15 : vector<1x256xf32> to vector<8x256xf32>
    %41 = arith.mulf %39, %40 : vector<8x256xf32>
    %c239_i32 = arith.constant 239 : i32
    %42 = tpu.dynamic_rotate %20 by %c239_i32 dim 1 : vector<8x256xf32>, i32 -> vector<8x256xf32>
    %43 = vector.broadcast %17 : vector<1x256xf32> to vector<8x256xf32>
    %44 = arith.mulf %42, %43 : vector<8x256xf32>
    %45 = tpu.concatenate %23, %26, %29, %32, %20, %35, %38, %41, %44 in 0 : vector<8x256xf32>, vector<8x256xf32>, vector<8x256xf32>, vector<8x256xf32>, vector<8x256xf32>, vector<8x256xf32>, vector<8x256xf32>, vector<8x256xf32>, vector<8x256xf32> -> vector<72x256xf32>
    %cst = arith.constant dense<0.000000e+00> : vector<16x256xf32>
    %46 = tpu.matmul %0, %45, %cst {dimension_numbers = #tpu.dot_dimension_numbers<[1], [0], [0], [1], [0, 0, 1, 1], [], []>} : vector<16x72xf32>, vector<72x256xf32>, vector<16x256xf32> -> vector<16x256xf32>
    %47 = vector.broadcast %1 : vector<16x1xf32> to vector<16x256xf32>
    %48 = arith.addf %46, %47 : vector<16x256xf32>
    %cst_22 = arith.constant 0.000000e+00 : f32
    %49 = vector.broadcast %cst_22 : f32 to vector<16x256xf32>
    %50 = arith.maximumf %48, %49 : vector<16x256xf32>
    %51 = arith.index_cast %c0_i32 : i32 to index
    %c0_23 = arith.constant 0 : index
    %c0_24 = arith.constant 0 : index
    %52 = vector.load %arg5[%51, %c0_23, %c0_24] : memref<1x16x256xf32, #tpu.memory_space<vmem>>, vector<1x16x256xf32>
    %53 = vector.shape_cast %52 : vector<1x16x256xf32> to vector<16x256xf32>
    %54 = vector.shape_cast %50 : vector<16x256xf32> to vector<1x16x256xf32>
    tpu.vector_store %arg5[%51, %c0_23, %c0_24], %54 {strides = array<i32>} : memref<1x16x256xf32, #tpu.memory_space<vmem>>, vector<1x16x256xf32>,
    %c1_i32_25 = arith.constant 1 : i32
    return
  }
  func.func @transform_0(%arg0: i32) -> (i32, i32, i32) {
    %c0_i32 = arith.constant 0 : i32
    %c0_i32_0 = arith.constant 0 : i32
    %c0_i32_1 = arith.constant 0 : i32
    %c0_i32_2 = arith.constant 0 : i32
    return %c0_i32, %c0_i32_0, %c0_i32_1 : i32, i32, i32
  }
  func.func @transform_1(%arg0: i32) -> (i32, i32, i32) {
    %c0_i32 = arith.constant 0 : i32
    %c0_i32_0 = arith.constant 0 : i32
    %c0_i32_1 = arith.constant 0 : i32
    return %arg0, %c0_i32, %c0_i32_0 : i32, i32, i32
  }
  func.func @transform_2(%arg0: i32) -> (i32, i32) {
    %c0_i32 = arith.constant 0 : i32
    %c0_i32_0 = arith.constant 0 : i32
    %c0_i32_1 = arith.constant 0 : i32
    return %c0_i32, %c0_i32_0 : i32, i32
  }
  func.func @transform_3(%arg0: i32) -> (i32, i32) {
    %c0_i32 = arith.constant 0 : i32
    %c0_i32_0 = arith.constant 0 : i32
    %c0_i32_1 = arith.constant 0 : i32
    return %c0_i32, %c0_i32_0 : i32, i32
  }
  func.func @transform_4(%arg0: i32) -> (i32, i32, i32) {
    %c0_i32 = arith.constant 0 : i32
    %c0_i32_0 = arith.constant 0 : i32
    %c0_i32_1 = arith.constant 0 : i32
    return %arg0, %c0_i32, %c0_i32_0 : i32, i32, i32
  }
}

</mosaic_0001>

<bundles_post_ra>
// kernel: tpu_custom_call.1
= control target key start
LH: loop header
LB: loop body
LE: loop exit
PB: predicated region body
PF: predicated region fallthrough
CT: control target
= control target key end

     0   :  { %9 = vsyncpa [#allocation3], 0  ;;  %s615_s0 = inlined_call_operand.hbm [shape: f32[9,1,256], index: 0, kind: input, shape index: {}]   ;;  %s616_s1 = inlined_call_operand.vmem [shape: f32[1,8,256], index: 1, kind: input, shape index: {}]   ;;  %s617_s2 = inlined_call_operand.hbm [shape: f32[16,72], index: 2, kind: input, shape index: {}]   ;;  %s618_s3 = inlined_call_operand.vmem [shape: f32[16,1], index: 3, kind: input, shape index: {}]   ;;  %s619_s4 = inlined_call_operand.hbm [shape: f32[1,16,256], index: 4, kind: output, shape index: {}]  }
   0x1   :  { %10 = vsyncpa [#allocation6], 0 }
   0x2   :  { %11 = vsyncpa [#allocation4], 0  ;;  %s469_s15 = smov [#allocation2]   ;;  %s397_s19 = scalar_lea.hbm %s615_s0, 288 }
   0x3   :  { %s17_s16 = sshll.u32 %s469_s15, 4  ;;  %p398_p0 = scmp.ne.s32.totalorder %s615_s0, %s397_s19  ;;  %s18_s16 = int_to_ptr.vmem [resolvable:$true] %s17_s16 }
   0x4   :  { %p401_p1 = scmp.lt.u32.totalorder %s397_s19, %s615_s0 }
   0x6   :  { %p403_p2 = pnand %p401_p1, %p398_p0 }
   0x8   :  { %406 = shalt.err (!%p403_p2)
}
   0x9   :  { %s407_s24 = scalar_lea.vmem %s18_s16, 288  ;;  %p412_p4 = scmp.lt.s32.totalorder %s18_s16, %s18_s16 }
   0xa   :  { %p408_p3 = scmp.ne.s32.totalorder %s18_s16, %s407_s24  ;;  %p413_p5 = scmp.lt.s32.totalorder %s407_s24, %s407_s24 }
   0xc   :  { %p414_p6 = por %p413_p5, %p412_p4 }
   0xe   :  { %p415_p7 = pnand %p414_p6, %p408_p3 }
  0x10   :  { %418 = shalt.err (!%p415_p7)
}
  0x11   :  { %s470_s25 = smov 32   ;;  %s471_s26 = smov 2  }
  0x12   :  { %23 = dma.hbm_to_vmem [thread:$0]  %s615_s0, 288, %s18_s16, [#allocation3], %s470_s25, %s470_s25, %s471_s26  }
  0x13   :  { %s472_s29 = smov [#allocation5]   ;;  %s419_s7 = scalar_lea.hbm %s617_s2, 256 }
  0x14   :  { %s31_s30 = sshll.u32 %s472_s29, 4  ;;  %p420_p8 = scmp.ne.s32.totalorder %s617_s2, %s419_s7  ;;  %s32_s30 = int_to_ptr.vmem [resolvable:$true] %s31_s30 }
  0x15   :  { %p423_p9 = scmp.lt.u32.totalorder %s419_s7, %s617_s2 }
  0x17   :  { %p425_p10 = pnand %p423_p9, %p420_p8 }
  0x19   :  { %428 = shalt.err (!%p425_p10)
}
  0x1a   :  { %s429_s12 = scalar_lea.vmem %s32_s30, 256  ;;  %p434_p12 = scmp.lt.s32.totalorder %s32_s30, %s32_s30 }
  0x1b   :  { %p430_p11 = scmp.ne.s32.totalorder %s32_s30, %s429_s12  ;;  %p435_p13 = scmp.lt.s32.totalorder %s429_s12, %s429_s12 }
  0x1d   :  { %p436_p0 = por %p435_p13, %p434_p12 }
  0x1f   :  { %p437_p1 = pnand %p436_p0, %p430_p11 }
  0x21   :  { %440 = shalt.err (!%p437_p1)
}
  0x22   :  { %s473_s0 = smov 128   ;;  %s474_s13 = smov 8  }
  0x23   :  { %37 = dma.hbm_to_vmem [thread:$0]  %s617_s2, 256, %s32_s30, [#allocation6], %s473_s0, %s473_s0, %s474_s13  }
  0x24   :  { %463 = dma.done.wait [#allocation3], 288  }
  0x25   :  { %464 = vsyncadd [#allocation3], 4294967008 }
  0x26   :  { %465 = dma.done.wait [#allocation6], 256  }
  0x27   :  { %466 = vsyncadd [#allocation6], 4294967040  ;;  %v539_v0 = vld [vmem:[%s616_s1] sm:$0xff]  ;;  %s475_s18 = smov 16   ;;  %s476_s19 = smov 17   ;;  %v547_v1 = vld [vmem:[%s616_s1 + $0x8] sm:$0xff]  ;;  %v71_v6 = vlaneseq }
  0x28   :  { %89 = vrot.lane.b32.xlu1 %v539_v0, %s475_s18  ;;  %67 = vrot.lane.b32.xlu0 %v539_v0, %s476_s19  ;;  %s477_s2 = smov 15   ;;  %s478_s22 = smov 1   ;;  %v481_v2 = vmov 0.0   ;;  %v482_v3 = vmov 0   ;;  %v49_v4 = vld [vmem:[%s618_s3 + $0x8] sm:$0xff]  ;;  %v48_v5 = vld [vmem:[%s618_s3] sm:$0xff] }
  0x29   :  { %s479_s23 = smov 127   ;;  %s480_s1 = smov 113   ;;  %310 = vmatprep.mubr.f32.mxu0 %v481_v2  ;;  %316 = vmatprep.mubr.f32.mxu1 %v481_v2  ;;  %v78_v7 = vshrl.u32 %v71_v6, 7  ;;  %v570_v8 = vand.u32 127, %v71_v6  ;;  %v52_v11 = vld [vmem:[#allocation2 + $0x2] sm:$0x3] }
  0x2a   :  { %396 = vset.pattern.permute.xlu1 %v482_v3  ;;  %395 = vset.pattern.permute.xlu0 %v482_v3  ;;  %s483_s24 = smov 112   ;;  %s484_s25 = smov 111   ;;  %v50_v12 = vld [vmem:[#allocation2] sm:$0x3]  ;;  %v54_v29 = vld [vmem:[#allocation2 + $0x4] sm:$0x3] }
  0x2b   :  { %v572_v9 = vsub.s32 0, %v78_v7  ;;  %v574_v10 = vsub.s32 1, %v78_v7  ;;  %vm93_vm0 = vcmp.lt.s32.totalorder %v570_v8, 16  ;;  %vm73_vm1 = vcmp.lt.s32.totalorder %v570_v8, 17  ;;  %v56_v30 = vld [vmem:[#allocation2 + $0x6] sm:$0x3] }
  0x2c   :  { %91 = vrot.lane.b32.xlu1 %v547_v1, %s475_s18  ;;  %69 = vrot.lane.b32.xlu0 %v547_v1, %s476_s19  ;;  %vm113_vm2 = vcmp.lt.s32.totalorder %v570_v8, 15  ;;  %vm133_vm3 = vcmp.lt.s32.totalorder %v570_v8, 1  ;;  %v58_v39 = vld [vmem:[#allocation2 + $0xa] sm:$0x3]  ;;  %vm153_vm4 = vcmp.lt.s32.totalorder %v570_v8, 127  ;;  %vm173_vm5 = vcmp.lt.s32.totalorder %v570_v8, 113 }
  0x2d   :  { %v100_v15 = vrot.slane %v52_v11, %v572_v9  ;;  %v104_v16 = vrot.slane %v52_v11, %v574_v10  ;;  %v80_v17 = vrot.slane %v50_v12, %v572_v9  ;;  %v84_v18 = vrot.slane %v50_v12, %v574_v10  ;;  %v60_v60 = vld [vmem:[#allocation2 + $0xc] sm:$0x3]  ;;  %v62_v61 = vld [vmem:[#allocation2 + $0xe] sm:$0x3]  ;;  %v64_v11 = vld [vmem:[#allocation2 + $0x10] sm:$0x3] }
  0x2e   :  { %v120_v35 = vrot.slane %v54_v29, %v572_v9  ;;  %v124_v36 = vrot.slane %v54_v29, %v574_v10  ;;  %v140_v37 = vrot.slane %v56_v30, %v572_v9  ;;  %v144_v38 = vrot.slane %v56_v30, %v574_v10  ;;  %s485_s3 = smov [#allocation7]  }
  0x2f   :  { %v160_v46 = vrot.slane %v58_v39, %v572_v9  ;;  %v164_v47 = vrot.slane %v58_v39, %v574_v10  ;;  %vm193_vm6 = vcmp.lt.s32.totalorder %v570_v8, 112  ;;  %v200_v6 = vrot.slane %v62_v61, %v572_v9  ;;  %s336_s30 = sshll.u32 %s485_s3, 4  ;;  %s337_s30 = int_to_ptr.vmem [resolvable:$true] %s336_s30 }
  0x30   :  { %111 = vrot.lane.b32.xlu1 %v547_v1, %s477_s2  ;;  %109 = vrot.lane.b32.xlu0 %v539_v0, %s477_s2  ;;  %v204_v7 = vrot.slane %v62_v61, %v574_v10  ;;  %vm213_vm7 = vcmp.lt.s32.totalorder %v570_v8, 111  ;;  %v46_v8 = vld [vmem:[#allocation5] sm:$0xff]  ;;  %vm239_vm8 = vcmask 588800   ;;  %s441_s5 = scalar_lea.vmem %s337_s30, 512  ;;  %p446_p3 = scmp.lt.s32.totalorder %s337_s30, %s337_s30 }
  0x31   :  { %p442_p2 = scmp.ne.s32.totalorder %s337_s30, %s441_s5  ;;  %p447_p4 = scmp.lt.s32.totalorder %s441_s5, %s441_s5 }
  0x33   :  { %p448_p5 = por %p447_p4, %p446_p3 }
  0x34   :  { %131 = vrot.lane.b32.xlu1 %v547_v1, %s478_s22  ;;  %129 = vrot.lane.b32.xlu0 %v539_v0, %s478_s22 }
  0x35   :  { %p449_p6 = pnand %p448_p5, %p442_p2 }
  0x38   :  { %151 = vrot.lane.b32.xlu1 %v547_v1, %s479_s23  ;;  %149 = vrot.lane.b32.xlu0 %v539_v0, %s479_s23 }
  0x3c   :  { %171 = vrot.lane.b32.xlu1 %v547_v1, %s480_s1  ;;  %169 = vrot.lane.b32.xlu0 %v539_v0, %s480_s1 }
  0x40   :  { %191 = vrot.lane.b32.xlu1 %v547_v1, %s483_s24  ;;  %189 = vrot.lane.b32.xlu0 %v539_v0, %s483_s24 }
  0x44   :  { %211 = vrot.lane.b32.xlu1 %v547_v1, %s484_s25  ;;  %209 = vrot.lane.b32.xlu0 %v539_v0, %s484_s25 }
  0x48   :  { %236 = vperm.xlu1 %396, %v49_v4   ;;  %231 = vperm.xlu0 %395, %v48_v5   ;;  %v180_v4 = vrot.slane %v60_v60, %v572_v9  ;;  %v184_v5 = vrot.slane %v60_v60, %v574_v10 }
  0x9a   :  { %v90_v13 = vpop.permute.xlu1 %89  ;;  %v68_v14 = vpop.permute.xlu0 %67 }
  0x9e   :  { %v92_v19 = vpop.permute.xlu1 %91  ;;  %v70_v20 = vpop.permute.xlu0 %69 }
  0x9f   :  { %v94_v21 = vsel %vm93_vm0, %v90_v13, %v92_v19  ;;  %v95_v22 = vsel %vm93_vm0, %v92_v19, %v90_v13  ;;  %v74_v23 = vsel %vm73_vm1, %v68_v14, %v70_v20  ;;  %v75_v24 = vsel %vm73_vm1, %v70_v20, %v68_v14 }
  0xa0   :  { %v107_v25 = vmul.f32 %v100_v15, %v95_v22  ;;  %v108_v26 = vmul.f32 %v104_v16, %v94_v21  ;;  %v87_v27 = vmul.f32 %v80_v17, %v75_v24  ;;  %v88_v28 = vmul.f32 %v84_v18, %v74_v23 }
  0xa1   :  { %v224_v16 = vrot.slane %v64_v11, %v574_v10  ;;  %v220_v21 = vrot.slane %v64_v11, %v572_v9  ;;  %v47_v10 = vld [vmem:[#allocation5 + $0x8] sm:$0xff] }
  0xa2   :  { %v112_v31 = vpop.permute.xlu1 %111  ;;  %v110_v32 = vpop.permute.xlu0 %109  ;;  %v351_v33 = vpack.c.bf16 %v108_v26, %v88_v28  ;;  %v353_v34 = vpack.c.bf16 %v107_v25, %v87_v27 }
  0xa3   :  { %v114_v40 = vsel %vm113_vm2, %v110_v32, %v112_v31  ;;  %v115_v41 = vsel %vm113_vm2, %v112_v31, %v110_v32 }
  0xa4   :  { %352 = vmatprep.subr.bf16.mxu0 %v351_v33  ;;  %367 = vmatprep.subr.bf16.mxu1 %v351_v33  ;;  %v127_v48 = vmul.f32 %v120_v35, %v115_v41  ;;  %v128_v49 = vmul.f32 %v124_v36, %v114_v40 }
  0xa5   :  { %354 = vmatpush1.bf16.msra.mxu0 %v353_v34  ;;  %372 = vmatpush1.bf16.msra.mxu1 %v353_v34 }
  0xa6   :  { %v132_v42 = vpop.permute.xlu1 %131  ;;  %v130_v43 = vpop.permute.xlu0 %129 }
  0xa7   :  { %v134_v44 = vsel %vm133_vm3, %v130_v43, %v132_v42  ;;  %v135_v45 = vsel %vm133_vm3, %v132_v42, %v130_v43 }
  0xa8   :  { %v147_v50 = vmul.f32 %v140_v37, %v135_v45  ;;  %v148_v51 = vmul.f32 %v144_v38, %v134_v44 }
  0xaa   :  { %v152_v52 = vpop.permute.xlu1 %151  ;;  %v150_v53 = vpop.permute.xlu0 %149  ;;  %v355_v54 = vpack.c.bf16 %v148_v51, %v128_v49  ;;  %v357_v55 = vpack.c.bf16 %v147_v50, %v127_v48 }
  0xab   :  { %v154_v56 = vsel %vm153_vm4, %v150_v53, %v152_v52  ;;  %v155_v57 = vsel %vm153_vm4, %v152_v52, %v150_v53 }
  0xac   :  { %v167_v58 = vmul.f32 %v160_v46, %v154_v56  ;;  %v168_v59 = vmul.f32 %v164_v47, %v155_v57  ;;  %356 = vmatprep.subr.bf16.mxu0 %v355_v54  ;;  %368 = vmatprep.subr.bf16.mxu1 %v355_v54 }
  0xad   :  { %358 = vmatpush1.bf16.msra.mxu0 %v357_v55  ;;  %373 = vmatpush1.bf16.msra.mxu1 %v357_v55 }
  0xae   :  { %v172_v62 = vpop.permute.xlu1 %171  ;;  %v170_v63 = vpop.permute.xlu0 %169  ;;  %v359_v2 = vpack.c.bf16 %v168_v59, %v547_v1  ;;  %v361_v3 = vpack.c.bf16 %v167_v58, %v539_v0 }
  0xaf   :  { %v174_v12 = vsel %vm173_vm5, %v170_v63, %v172_v62  ;;  %v175_v13 = vsel %vm173_vm5, %v172_v62, %v170_v63 }
  0xb0   :  { %360 = vmatprep.subr.bf16.mxu0 %v359_v2  ;;  %369 = vmatprep.subr.bf16.mxu1 %v359_v2  ;;  %v187_v17 = vmul.f32 %v180_v4, %v174_v12  ;;  %v188_v18 = vmul.f32 %v184_v5, %v175_v13 }
  0xb1   :  { %362 = vmatpush1.bf16.msra.mxu0 %v361_v3  ;;  %374 = vmatpush1.bf16.msra.mxu1 %v361_v3 }
  0xb2   :  { %v192_v1 = vpop.permute.xlu1 %191  ;;  %v190_v14 = vpop.permute.xlu0 %189 }
  0xb3   :  { %v194_v0 = vsel %vm193_vm6, %v190_v14, %v192_v1  ;;  %v195_v15 = vsel %vm193_vm6, %v192_v1, %v190_v14 }
  0xb4   :  { %v207_v19 = vmul.f32 %v200_v6, %v194_v0  ;;  %v208_v20 = vmul.f32 %v204_v7, %v195_v15 }
  0xb6   :  { %v212_v22 = vpop.permute.xlu1 %211  ;;  %v210_v23 = vpop.permute.xlu0 %209  ;;  %v363_v24 = vpack.c.bf16 %v208_v20, %v188_v18  ;;  %v365_v25 = vpack.c.bf16 %v207_v19, %v187_v17 }
  0xb7   :  { %v214_v26 = vsel %vm213_vm7, %v210_v23, %v212_v22  ;;  %v215_v27 = vsel %vm213_vm7, %v212_v22, %v210_v23 }
  0xb8   :  { %v228_v28 = vmul.f32 %v224_v16, %v215_v27  ;;  %364 = vmatprep.subr.bf16.mxu0 %v363_v24  ;;  %370 = vmatprep.subr.bf16.mxu1 %v363_v24  ;;  %v227_v29 = vmul.f32 %v220_v21, %v214_v26 }
  0xb9   :  { %366 = vmatpush1.bf16.msra.mxu0 %v365_v25  ;;  %375 = vmatpush1.bf16.msra.mxu1 %v365_v25 }
  0xba   :  { %262 = vmatprep.subr.mxu0 %v228_v28  ;;  %371 = vmatprep.subr.mxu1 %v228_v28 }
  0xbd   :  { %263 = vmatpush1.msra.mxu0 %v227_v29  ;;  %376 = vmatpush1.msra.mxu1 %v227_v29 }
  0xbe   :  { %349 = vmatmul.mubr.msk.f32.vlgmr.msra.gmra.mrb[0].mxu0 %vm239_vm8, %v46_v8  ;;  %350 = vmatmul.mubr.msk.f32.vlgmr.msra.gmra.mrb[0].mxu1 %vm239_vm8, %v47_v10 }
  0xc7   :  { %v237_v9 = vpop.permute.xlu1 %236  ;;  %v232_v30 = vpop.permute.xlu0 %231 }
 0x191   :  { %v312_v31 = vpop.f32.mrb[0].mxu0  ;;  %v318_v32 = vpop.f32.mrb[0].mxu1 }
 0x192   :  { %v313_v33 = vadd.f32 %v312_v31, %v232_v30  ;;  %v319_v34 = vadd.f32 %v318_v32, %v237_v9  ;;  %v314_v35 = vpop.f32.mrb[1].mxu0  ;;  %v320_v36 = vpop.f32.mrb[1].mxu1 }
 0x193   :  { %v315_v37 = vadd.f32 %v314_v35, %v232_v30  ;;  %v321_v38 = vadd.f32 %v320_v36, %v237_v9 }
 0x194   :  { %v323_v39 = vmax.f32 %v313_v33, 0.0  ;;  %v325_v40 = vmax.f32 %v319_v34, 0.0 }
 0x195   :  { %v324_v41 = vmax.f32 %v315_v37, 0.0  ;;  %v326_v42 = vmax.f32 %v321_v38, 0.0 }
 0x196   :  { %327 = vst [vmem:[#allocation7] sm:$0xff] %v323_v39  ;;  %329 = vst [vmem:[#allocation7 + $0x10] sm:$0xff] %v325_v40 }
 0x197   :  { %328 = vst [vmem:[#allocation7 + $0x8] sm:$0xff] %v324_v41  ;;  %330 = vst [vmem:[#allocation7 + $0x18] sm:$0xff] %v326_v42 }
 0x198   :  { %452 = shalt.err (!%p449_p6)
}
 0x199   :  { %s453_s8 = scalar_lea.hbm %s619_s4, 512 }
 0x19a   :  { %p454_p7 = scmp.ne.s32.totalorder %s619_s4, %s453_s8  ;;  %p457_p8 = scmp.lt.u32.totalorder %s453_s8, %s619_s4 }
 0x19c   :  { %p459_p9 = pnand %p457_p8, %p454_p7 }
 0x19e   :  { %462 = shalt.err (!%p459_p9)
}
 0x19f   :  { %s486_s0 = smov 256  }
 0x1a0   :  { %342 = dma.vmem_to_hbm [thread:$0]  %s337_s30, 512, %s619_s4, [#allocation4], %s486_s0, %s486_s0, %s475_s18  }
 0x1a1   :  { %467 = dma.done.wait [#allocation4], 512  }
 0x1a2   :  { %468 = vsyncadd [#allocation4], 4294966784 }
 0x1a3   :  { %346 = vsyncpa [#allocation3], 1 }
 0x1a4   :  { %347 = vsyncpa [#allocation6], 1 }
 0x1a5   :  { %348 = vsyncpa [#allocation4], 1 }

</bundles_post_ra>
